<compile_context>
chip_gen: v5e
topology: v5e:2x2
jax: 0.10.0
libtpu: 0.0.40
codegen_flags: <defaults>
</compile_context>

<pallas_src>
import jax
import jax.numpy as jnp
from jax.experimental import pallas as pl
from jax.experimental.pallas import tpu as pltpu


# ----------------------------------------------------------------------------
# Fused Pallas kernel: 5 GCNConv layers (+ReLU) + Linear + LeakyReLU
# ----------------------------------------------------------------------------
def _gcn_fused_kernel(a_ref, x_ref,
                      w1_ref, b1_ref, w2_ref, b2_ref, w3_ref, b3_ref,
                      w4_ref, b4_ref, w5_ref, b5_ref,
                      lw_ref, lb_ref, o_ref):
    a = a_ref[...]                                             # bf16 [N, N]

    # --- conv1 (2 -> 32): C_in < C_out, aggregate first: (A @ X) @ W1 -------
    agg = jnp.dot(a, x_ref[...].astype(jnp.bfloat16),
                  preferred_element_type=jnp.float32)          # [N, 2]  f32
    w1 = w1_ref[...]                                           # bf16 [2, 32]
    # K=2 contraction on the VPU (broadcast mul-add) -> no MXU padding waste.
    h = agg[:, 0:1] * w1[0:1, :] + agg[:, 1:2] * w1[1:2, :]
    h = jnp.maximum(h + b1_ref[...], 0.0)                      # [N, 32] f32

    # --- conv2 (32 -> 128): aggregate in the narrow (32) width first --------
    agg = jnp.dot(a, h.astype(jnp.bfloat16),
                  preferred_element_type=jnp.float32)          # [N, 32] f32
    h = jnp.dot(agg.astype(jnp.bfloat16), w2_ref[...],
                preferred_element_type=jnp.float32) + b2_ref[...]
    h = jnp.maximum(h, 0.0)                                    # [N, 128] f32

    # --- conv3..conv5 (128 -> 128): A @ (X @ W) --------------------------------
    for w_ref, b_ref in ((w3_ref, b3_ref), (w4_ref, b4_ref), (w5_ref, b5_ref)):
        xw = jnp.dot(h.astype(jnp.bfloat16), w_ref[...],
                     preferred_element_type=jnp.float32)
        h = jnp.dot(a, xw.astype(jnp.bfloat16),
                    preferred_element_type=jnp.float32) + b_ref[...]
        h = jnp.maximum(h, 0.0)

    # --- Linear head (128 -> 1), padded to 128 lanes for a lane-dense store --
    y = jnp.dot(h.astype(jnp.bfloat16), lw_ref[...],
                preferred_element_type=jnp.float32) + lb_ref[...]
    o_ref[...] = jnp.where(y > 0.0, y, 0.01 * y)               # LeakyReLU(0.01)


# ----------------------------------------------------------------------------
# Wrapper: one pallas_call for the whole forward pass
# ----------------------------------------------------------------------------
@jax.jit
def gcn_forward(params, x, a_hat):
    n = x.shape[0]

    # One-time operand prep (fused into the jit): bf16 MXU operands, (1, C)
    # biases, lane-dense padded linear head.
    ins = [a_hat.astype(jnp.bfloat16), x]
    for i in range(1, 6):
        ins.append(params[f"conv{i}_w"].astype(jnp.bfloat16))
        ins.append(params[f"conv{i}_b"].reshape(1, -1))
    lw_pad = (jnp.zeros((128, 128), jnp.float32)
              .at[:, 0:1].set(params["lin_w"])).astype(jnp.bfloat16)
    lb_pad = jnp.zeros((1, 128), jnp.float32).at[0, 0].set(params["lin_b"][0])
    ins += [lw_pad, lb_pad]

    out_padded = pl.pallas_call(
        _gcn_fused_kernel,
        out_shape=jax.ShapeDtypeStruct((n, 128), jnp.float32),
        in_specs=[pl.BlockSpec(arr.shape, lambda: (0, 0)) for arr in ins],
        out_specs=pl.BlockSpec((n, 128), lambda: (0, 0)),
        compiler_params=pltpu.CompilerParams(vmem_limit_bytes=32 * 1024 * 1024),
    )(*ins)
    return out_padded[:, :1]                                   # [N, 1]


# ----------------------------------------------------------------------------
# Graph preprocessing (plain JAX glue): dense symmetric-normalized adjacency
#   A_hat = D^-1/2 (A + I) D^-1/2   (GCNConv default: add_self_loops=True)
# ----------------------------------------------------------------------------
def normalized_adjacency(edge_index, num_nodes):
    src = edge_index[0]
    dst = edge_index[1]
    a = jnp.zeros((num_nodes, num_nodes), dtype=jnp.float32)
    a = a.at[dst, src].add(1.0)                 # message flows src -> dst
    a = a + jnp.eye(num_nodes, dtype=jnp.float32)
    deg = jnp.sum(a, axis=1)
    d_inv_sqrt = jnp.where(deg > 0, 1.0 / jnp.sqrt(deg), 0.0)
    return d_inv_sqrt[:, None] * a * d_inv_sqrt[None, :]


# ----------------------------------------------------------------------------
# Parameter init (deterministic, synthetic — not a checkpoint load)
# ----------------------------------------------------------------------------
def init_params(key):
    dims = [(2, 32), (32, 128), (128, 128), (128, 128), (128, 128)]
    params = {}
    keys = jax.random.split(key, len(dims) + 1)
    for i, (cin, cout) in enumerate(dims):
        kw, kb = jax.random.split(keys[i])
        scale = 1.0 / jnp.sqrt(jnp.float32(cin))
        params[f"conv{i + 1}_w"] = jax.random.uniform(
            kw, (cin, cout), jnp.float32, -scale, scale)
        params[f"conv{i + 1}_b"] = jax.random.uniform(
            kb, (cout,), jnp.float32, -scale, scale)
    kw, kb = jax.random.split(keys[-1])
    scale = 1.0 / jnp.sqrt(jnp.float32(128))
    params["lin_w"] = jax.random.uniform(kw, (128, 1), jnp.float32, -scale, scale)
    params["lin_b"] = jax.random.uniform(kb, (1,), jnp.float32, -scale, scale)
    return params


# ----------------------------------------------------------------------------
# Plain-JAX reference (f32) for a correctness cross-check
# ----------------------------------------------------------------------------
def gcn_reference(params, x, a_hat):
    h = x
    for i in range(1, 6):
        h = a_hat @ (h @ params[f"conv{i}_w"]) + params[f"conv{i}_b"]
        h = jnp.maximum(h, 0.0)
    y = h @ params["lin_w"] + params["lin_b"]
    return jnp.where(y > 0.0, y, 0.01 * y)


if __name__ == "__main__":
    key = jax.random.PRNGKey(0)
    k_x, k_p = jax.random.split(key)

    num_nodes = 8
    # node features: [N, 2]
    x = jax.random.normal(k_x, (num_nodes, 2), dtype=jnp.float32)
    # small undirected ring graph: edge_index [2, E]
    src = jnp.arange(num_nodes, dtype=jnp.int32)
    dst = (src + 1) % num_nodes
    edge_index = jnp.stack(
        [jnp.concatenate([src, dst]), jnp.concatenate([dst, src])], axis=0)

    a_hat = normalized_adjacency(edge_index, num_nodes)
    params = init_params(k_p)

    out = gcn_forward(params, x, a_hat)
    jax.block_until_ready(out)
    assert out.shape == (num_nodes, 1)

    ref = gcn_reference(params, x, a_hat)
    max_err = float(jnp.max(jnp.abs(out - ref)))
    assert max_err < 5e-2, f"max abs error vs reference: {max_err:.4e}"

    print("KERNEL_OK")
</pallas_src>

<mosaic_0001>
module attributes {stable_mosaic.version = 11 : i64} {
  func.func @_gcn_fused_kernel(%arg0: memref<8x8xbf16, #tpu.memory_space<vmem>>, %arg1: memref<8x2xf32, #tpu.memory_space<vmem>>, %arg2: memref<2x32xbf16, #tpu.memory_space<vmem>>, %arg3: memref<1x32xf32, #tpu.memory_space<vmem>>, %arg4: memref<32x128xbf16, #tpu.memory_space<vmem>>, %arg5: memref<1x128xf32, #tpu.memory_space<vmem>>, %arg6: memref<128x128xbf16, #tpu.memory_space<vmem>>, %arg7: memref<1x128xf32, #tpu.memory_space<vmem>>, %arg8: memref<128x128xbf16, #tpu.memory_space<vmem>>, %arg9: memref<1x128xf32, #tpu.memory_space<vmem>>, %arg10: memref<128x128xbf16, #tpu.memory_space<vmem>>, %arg11: memref<1x128xf32, #tpu.memory_space<vmem>>, %arg12: memref<128x128xbf16, #tpu.memory_space<vmem>>, %arg13: memref<1x128xf32, #tpu.memory_space<vmem>>, %arg14: memref<8x128xf32, #tpu.memory_space<vmem>>) attributes {dimension_semantics = [], scalar_prefetch = 0 : i64, scratch_operands = 0 : i64, tpu.core_type = #tpu.core_type<tc>} {
    %c0 = arith.constant 0 : index
    %c0_0 = arith.constant 0 : index
    %0 = vector.load %arg0[%c0, %c0_0] : memref<8x8xbf16, #tpu.memory_space<vmem>>, vector<8x8xbf16>
    %c0_1 = arith.constant 0 : index
    %c0_2 = arith.constant 0 : index
    %1 = vector.load %arg1[%c0_1, %c0_2] : memref<8x2xf32, #tpu.memory_space<vmem>>, vector<8x2xf32>
    %2 = arith.truncf %1 : vector<8x2xf32> to vector<8x2xbf16>
    %cst = arith.constant dense<0.000000e+00> : vector<8x2xf32>
    %3 = tpu.matmul %0, %2, %cst {dimension_numbers = #tpu.dot_dimension_numbers<[1], [0], [0], [1], [0, 0, 1, 1], [], []>} : vector<8x8xbf16>, vector<8x2xbf16>, vector<8x2xf32> -> vector<8x2xf32>
    %c0_3 = arith.constant 0 : index
    %c0_4 = arith.constant 0 : index
    %4 = vector.load %arg2[%c0_3, %c0_4] : memref<2x32xbf16, #tpu.memory_space<vmem>>, vector<2x32xbf16>
    %5 = vector.extract_strided_slice %3 {offsets = [0, 0], sizes = [8, 1], strides = [1, 1]} : vector<8x2xf32> to vector<8x1xf32>
    %6 = vector.extract_strided_slice %4 {offsets = [0, 0], sizes = [1, 32], strides = [1, 1]} : vector<2x32xbf16> to vector<1x32xbf16>
    %7 = arith.extf %6 : vector<1x32xbf16> to vector<1x32xf32>
    %8 = vector.broadcast %5 : vector<8x1xf32> to vector<8x32xf32>
    %9 = vector.broadcast %7 : vector<1x32xf32> to vector<8x32xf32>
    %10 = arith.mulf %8, %9 : vector<8x32xf32>
    %11 = vector.extract_strided_slice %3 {offsets = [0, 1], sizes = [8, 1], strides = [1, 1]} : vector<8x2xf32> to vector<8x1xf32>
    %12 = vector.extract_strided_slice %4 {offsets = [1, 0], sizes = [1, 32], strides = [1, 1]} : vector<2x32xbf16> to vector<1x32xbf16>
    %13 = arith.extf %12 : vector<1x32xbf16> to vector<1x32xf32>
    %14 = vector.broadcast %11 : vector<8x1xf32> to vector<8x32xf32>
    %15 = vector.broadcast %13 : vector<1x32xf32> to vector<8x32xf32>
    %16 = arith.mulf %14, %15 : vector<8x32xf32>
    %17 = arith.addf %10, %16 : vector<8x32xf32>
    %c0_5 = arith.constant 0 : index
    %c0_6 = arith.constant 0 : index
    %18 = vector.load %arg3[%c0_5, %c0_6] : memref<1x32xf32, #tpu.memory_space<vmem>>, vector<1x32xf32>
    %19 = vector.broadcast %18 : vector<1x32xf32> to vector<8x32xf32>
    %20 = arith.addf %17, %19 : vector<8x32xf32>
    %cst_7 = arith.constant 0.000000e+00 : f32
    %21 = vector.broadcast %cst_7 : f32 to vector<8x32xf32>
    %22 = arith.maximumf %20, %21 : vector<8x32xf32>
    %23 = arith.truncf %22 : vector<8x32xf32> to vector<8x32xbf16>
    %cst_8 = arith.constant dense<0.000000e+00> : vector<8x32xf32>
    %24 = tpu.matmul %0, %23, %cst_8 {dimension_numbers = #tpu.dot_dimension_numbers<[1], [0], [0], [1], [0, 0, 1, 1], [], []>} : vector<8x8xbf16>, vector<8x32xbf16>, vector<8x32xf32> -> vector<8x32xf32>
    %25 = arith.truncf %24 : vector<8x32xf32> to vector<8x32xbf16>
    %c0_9 = arith.constant 0 : index
    %c0_10 = arith.constant 0 : index
    %26 = vector.load %arg4[%c0_9, %c0_10] : memref<32x128xbf16, #tpu.memory_space<vmem>>, vector<32x128xbf16>
    %cst_11 = arith.constant dense<0.000000e+00> : vector<8x128xf32>
    %27 = tpu.matmul %25, %26, %cst_11 {dimension_numbers = #tpu.dot_dimension_numbers<[1], [0], [0], [1], [0, 0, 1, 1], [], []>} : vector<8x32xbf16>, vector<32x128xbf16>, vector<8x128xf32> -> vector<8x128xf32>
    %c0_12 = arith.constant 0 : index
    %c0_13 = arith.constant 0 : index
    %28 = vector.load %arg5[%c0_12, %c0_13] : memref<1x128xf32, #tpu.memory_space<vmem>>, vector<1x128xf32>
    %29 = vector.broadcast %28 : vector<1x128xf32> to vector<8x128xf32>
    %30 = arith.addf %27, %29 : vector<8x128xf32>
    %cst_14 = arith.constant 0.000000e+00 : f32
    %31 = vector.broadcast %cst_14 : f32 to vector<8x128xf32>
    %32 = arith.maximumf %30, %31 : vector<8x128xf32>
    %33 = arith.truncf %32 : vector<8x128xf32> to vector<8x128xbf16>
    %c0_15 = arith.constant 0 : index
    %c0_16 = arith.constant 0 : index
    %34 = vector.load %arg6[%c0_15, %c0_16] : memref<128x128xbf16, #tpu.memory_space<vmem>>, vector<128x128xbf16>
    %cst_17 = arith.constant dense<0.000000e+00> : vector<8x128xf32>
    %35 = tpu.matmul %33, %34, %cst_17 {dimension_numbers = #tpu.dot_dimension_numbers<[1], [0], [0], [1], [0, 0, 1, 1], [], []>} : vector<8x128xbf16>, vector<128x128xbf16>, vector<8x128xf32> -> vector<8x128xf32>
    %36 = arith.truncf %35 : vector<8x128xf32> to vector<8x128xbf16>
    %cst_18 = arith.constant dense<0.000000e+00> : vector<8x128xf32>
    %37 = tpu.matmul %0, %36, %cst_18 {dimension_numbers = #tpu.dot_dimension_numbers<[1], [0], [0], [1], [0, 0, 1, 1], [], []>} : vector<8x8xbf16>, vector<8x128xbf16>, vector<8x128xf32> -> vector<8x128xf32>
    %c0_19 = arith.constant 0 : index
    %c0_20 = arith.constant 0 : index
    %38 = vector.load %arg7[%c0_19, %c0_20] : memref<1x128xf32, #tpu.memory_space<vmem>>, vector<1x128xf32>
    %39 = vector.broadcast %38 : vector<1x128xf32> to vector<8x128xf32>
    %40 = arith.addf %37, %39 : vector<8x128xf32>
    %cst_21 = arith.constant 0.000000e+00 : f32
    %41 = vector.broadcast %cst_21 : f32 to vector<8x128xf32>
    %42 = arith.maximumf %40, %41 : vector<8x128xf32>
    %43 = arith.truncf %42 : vector<8x128xf32> to vector<8x128xbf16>
    %c0_22 = arith.constant 0 : index
    %c0_23 = arith.constant 0 : index
    %44 = vector.load %arg8[%c0_22, %c0_23] : memref<128x128xbf16, #tpu.memory_space<vmem>>, vector<128x128xbf16>
    %cst_24 = arith.constant dense<0.000000e+00> : vector<8x128xf32>
    %45 = tpu.matmul %43, %44, %cst_24 {dimension_numbers = #tpu.dot_dimension_numbers<[1], [0], [0], [1], [0, 0, 1, 1], [], []>} : vector<8x128xbf16>, vector<128x128xbf16>, vector<8x128xf32> -> vector<8x128xf32>
    %46 = arith.truncf %45 : vector<8x128xf32> to vector<8x128xbf16>
    %cst_25 = arith.constant dense<0.000000e+00> : vector<8x128xf32>
    %47 = tpu.matmul %0, %46, %cst_25 {dimension_numbers = #tpu.dot_dimension_numbers<[1], [0], [0], [1], [0, 0, 1, 1], [], []>} : vector<8x8xbf16>, vector<8x128xbf16>, vector<8x128xf32> -> vector<8x128xf32>
    %c0_26 = arith.constant 0 : index
    %c0_27 = arith.constant 0 : index
    %48 = vector.load %arg9[%c0_26, %c0_27] : memref<1x128xf32, #tpu.memory_space<vmem>>, vector<1x128xf32>
    %49 = vector.broadcast %48 : vector<1x128xf32> to vector<8x128xf32>
    %50 = arith.addf %47, %49 : vector<8x128xf32>
    %cst_28 = arith.constant 0.000000e+00 : f32
    %51 = vector.broadcast %cst_28 : f32 to vector<8x128xf32>
    %52 = arith.maximumf %50, %51 : vector<8x128xf32>
    %53 = arith.truncf %52 : vector<8x128xf32> to vector<8x128xbf16>
    %c0_29 = arith.constant 0 : index
    %c0_30 = arith.constant 0 : index
    %54 = vector.load %arg10[%c0_29, %c0_30] : memref<128x128xbf16, #tpu.memory_space<vmem>>, vector<128x128xbf16>
    %cst_31 = arith.constant dense<0.000000e+00> : vector<8x128xf32>
    %55 = tpu.matmul %53, %54, %cst_31 {dimension_numbers = #tpu.dot_dimension_numbers<[1], [0], [0], [1], [0, 0, 1, 1], [], []>} : vector<8x128xbf16>, vector<128x128xbf16>, vector<8x128xf32> -> vector<8x128xf32>
    %56 = arith.truncf %55 : vector<8x128xf32> to vector<8x128xbf16>
    %cst_32 = arith.constant dense<0.000000e+00> : vector<8x128xf32>
    %57 = tpu.matmul %0, %56, %cst_32 {dimension_numbers = #tpu.dot_dimension_numbers<[1], [0], [0], [1], [0, 0, 1, 1], [], []>} : vector<8x8xbf16>, vector<8x128xbf16>, vector<8x128xf32> -> vector<8x128xf32>
    %c0_33 = arith.constant 0 : index
    %c0_34 = arith.constant 0 : index
    %58 = vector.load %arg11[%c0_33, %c0_34] : memref<1x128xf32, #tpu.memory_space<vmem>>, vector<1x128xf32>
    %59 = vector.broadcast %58 : vector<1x128xf32> to vector<8x128xf32>
    %60 = arith.addf %57, %59 : vector<8x128xf32>
    %cst_35 = arith.constant 0.000000e+00 : f32
    %61 = vector.broadcast %cst_35 : f32 to vector<8x128xf32>
    %62 = arith.maximumf %60, %61 : vector<8x128xf32>
    %63 = arith.truncf %62 : vector<8x128xf32> to vector<8x128xbf16>
    %c0_36 = arith.constant 0 : index
    %c0_37 = arith.constant 0 : index
    %64 = vector.load %arg12[%c0_36, %c0_37] : memref<128x128xbf16, #tpu.memory_space<vmem>>, vector<128x128xbf16>
    %cst_38 = arith.constant dense<0.000000e+00> : vector<8x128xf32>
    %65 = tpu.matmul %63, %64, %cst_38 {dimension_numbers = #tpu.dot_dimension_numbers<[1], [0], [0], [1], [0, 0, 1, 1], [], []>} : vector<8x128xbf16>, vector<128x128xbf16>, vector<8x128xf32> -> vector<8x128xf32>
    %c0_39 = arith.constant 0 : index
    %c0_40 = arith.constant 0 : index
    %66 = vector.load %arg13[%c0_39, %c0_40] : memref<1x128xf32, #tpu.memory_space<vmem>>, vector<1x128xf32>
    %67 = vector.broadcast %66 : vector<1x128xf32> to vector<8x128xf32>
    %68 = arith.addf %65, %67 : vector<8x128xf32>
    %cst_41 = arith.constant 0.000000e+00 : f32
    %69 = vector.broadcast %cst_41 : f32 to vector<8x128xf32>
    %70 = arith.cmpf ogt, %68, %69 : vector<8x128xf32>
    %cst_42 = arith.constant 0.00999999977 : f32
    %71 = vector.broadcast %cst_42 : f32 to vector<8x128xf32>
    %72 = arith.mulf %71, %68 : vector<8x128xf32>
    %73 = arith.select %70, %68, %72 : vector<8x128xi1>, vector<8x128xf32>
    %c0_43 = arith.constant 0 : index
    %c0_44 = arith.constant 0 : index
    %74 = vector.load %arg14[%c0_43, %c0_44] : memref<8x128xf32, #tpu.memory_space<vmem>>, vector<8x128xf32>
    tpu.vector_store %arg14[%c0_43, %c0_44], %73 {strides = array<i32>} : memref<8x128xf32, #tpu.memory_space<vmem>>, vector<8x128xf32>,
    return
  }
}

</mosaic_0001>

<bundles_post_ra>
// kernel: gcn_forward.1
= control target key start
LH: loop header
LB: loop body
LE: loop exit
PB: predicated region body
PF: predicated region fallthrough
CT: control target
= control target key end

     0   :  { %vm55_vm0 = vcmask 1043456   ;;  %v726_v1 = vmov 0   ;;  %vm51_vm1 = vcmask 64512   ;;  %v727_v7 = vmov 1   ;;  %s952_s1 = inlined_call_operand.vmem [shape: f32[8,2], index: 1, kind: input, shape index: {}]   ;;  %s953_s0 = inlined_call_operand.vmem [shape: bf16[8,8], index: 0, kind: input, shape index: {}]   ;;  %s954_s3 = inlined_call_operand.vmem [shape: f32[1,32], index: 3, kind: input, shape index: {}]   ;;  %s955_s4 = inlined_call_operand.vmem [shape: bf16[32,128], index: 4, kind: input, shape index: {}]   ;;  %s956_s2 = inlined_call_operand.vmem [shape: bf16[2,32], index: 2, kind: input, shape index: {}]   ;;  %s957_s5 = inlined_call_operand.vmem [shape: f32[1,128], index: 5, kind: input, shape index: {}]   ;;  %s958_s6 = inlined_call_operand.vmem [shape: bf16[128,128], index: 6, kind: input, shape index: {}]   ;;  %s959_s7 = inlined_call_operand.vmem [shape: f32[1,128], index: 7, kind: input, shape index: {}]   ;;  %s960_s8 = inlined_call_operand.vmem [shape: bf16[128,128], index: 8, kind: input, shape index: {}]   ;;  %s961_s9 = inlined_call_operand.vmem [shape: f32[1,128], index: 9, kind: input, shape index: {}]   ;;  %s962_s10 = inlined_call_operand.vmem [shape: bf16[128,128], index: 10, kind: input, shape index: {}]   ;;  %s963_s11 = inlined_call_operand.vmem [shape: f32[1,128], index: 11, kind: input, shape index: {}]   ;;  %s964_s12 = inlined_call_operand.vmem [shape: bf16[128,128], index: 12, kind: input, shape index: {}]   ;;  %s965_s13 = inlined_call_operand.vmem [shape: f32[1,128], index: 13, kind: input, shape index: {}]   ;;  %s966_s14 = inlined_call_operand.vmem [shape: f32[8,128], index: 14, kind: output, shape index: {}]  }
   0x1   :  { %v49_v0 = vld [vmem:[%s952_s1] sm:$0xff]  ;;  %718 = vset.pattern.permute.xlu0 %v726_v1  ;;  %v683_v8 = vld [vmem:[%s955_s4 + $0x8] sm:$0xff]  ;;  %v691_v24 = vld [vmem:[%s958_s6 + $0x38] sm:$0xff]  ;;  %vm132_vm2 = vcmask 261120  }
   0x2   :  { %v50_v2 = vpack.c.bf16 %v49_v0, %v49_v0  ;;  %v810_v4 = vld [vmem:[%s953_s0] sm:$0xf]  ;;  %142 = vmatpush.bf16.msra.mxu2 %v683_v8  ;;  %215 = vmatpush.bf16.msra.mxu3 %v691_v24  ;;  %v690_v25 = vld [vmem:[%s958_s6 + $0x30] sm:$0xff]  ;;  %v689_v26 = vld [vmem:[%s958_s6 + $0x28] sm:$0xff] }
   0x3   :  { %v72_v9 = vld [vmem:[%s956_s2] sm:$0x1]  ;;  %v687_v28 = vld [vmem:[%s958_s6 + $0x18] sm:$0xff]  ;;  %v686_v29 = vld [vmem:[%s958_s6 + $0x10] sm:$0xff] }
   0x4   :  { %v57_v3 = vsel %vm55_vm0, %v50_v2, 0  ;;  %v73_v11 = vunpack.c.l.bf16 %v72_v9  ;;  %v720_v17 = vld [vmem:[%s954_s3] ss:$0 sm:$0xff]  ;;  %v685_v33 = vld [vmem:[%s958_s6 + $0x8] sm:$0xff]  ;;  %v699_v41 = vld [vmem:[%s960_s8 + $0x38] sm:$0xff] }
   0x5   :  { %66 = vmatpush.bf16.msra.mxu0 %v57_v3  ;;  %v682_v23 = vld [vmem:[%s955_s4] sm:$0xff]  ;;  %v698_v42 = vld [vmem:[%s960_s8 + $0x30] sm:$0xff]  ;;  %v697_v43 = vld [vmem:[%s960_s8 + $0x28] sm:$0xff] }
   0x6   :  { %v79_v12 = vperm.slane %v73_v11, 0  ;;  %v85_v13 = vperm.slane %v73_v11, 1  ;;  %143 = vmatpush.bf16.msra.mxu2 %v682_v23  ;;  %216 = vmatpush.bf16.msra.mxu3 %v690_v25  ;;  %v688_v27 = vld [vmem:[%s958_s6 + $0x20] sm:$0xff]  ;;  %v695_v45 = vld [vmem:[%s960_s8 + $0x18] sm:$0xff]  ;;  %v694_v46 = vld [vmem:[%s960_s8 + $0x10] sm:$0xff] }
   0x7   :  { %v684_v34 = vld [vmem:[%s958_s6] sm:$0xff]  ;;  %v693_v51 = vld [vmem:[%s960_s8 + $0x8] sm:$0xff]  ;;  %v707_v59 = vld [vmem:[%s962_s10 + $0x38] sm:$0xff] }
   0x8   :  { %540 = vmatmul.msk.bf16.vlgmr.msra.gmra.mxu0 %vm51_vm1, %v810_v4  ;;  %v721_v35 = vld [vmem:[%s957_s5] ss:$0 sm:$0xff]  ;;  %v706_v60 = vld [vmem:[%s962_s10 + $0x30] sm:$0xff]  ;;  %v705_v61 = vld [vmem:[%s962_s10 + $0x28] sm:$0xff] }
   0x9   :  { %v696_v44 = vld [vmem:[%s960_s8 + $0x20] sm:$0xff]  ;;  %v703_v63 = vld [vmem:[%s962_s10 + $0x18] sm:$0xff]  ;;  %v702_v0 = vld [vmem:[%s962_s10 + $0x10] sm:$0xff] }
   0xa   :  { %217 = vmatpush.bf16.msra.mxu3 %v689_v26  ;;  %v692_v52 = vld [vmem:[%s960_s8] sm:$0xff]  ;;  %v709_v24 = vld [vmem:[%s964_s12 + $0x8] sm:$0xff] }
   0xb   :  { %v722_v53 = vld [vmem:[%s959_s7] ss:$0 sm:$0xff] }
   0xc   :  { %v704_v62 = vld [vmem:[%s962_s10 + $0x20] sm:$0xff] }
   0xd   :  { %v723_v8 = vld [vmem:[%s961_s9] ss:$0 sm:$0xff] }
   0xe   :  { %218 = vmatpush.bf16.msra.mxu3 %v688_v27  ;;  %v708_v25 = vld [vmem:[%s964_s12] sm:$0xff] }
   0xf   :  { %v724_v26 = vld [vmem:[%s963_s11] ss:$0 sm:$0xff] }
  0x12   :  { %219 = vmatpush.bf16.msra.mxu3 %v687_v28 }
  0x16   :  { %220 = vmatpush.bf16.msra.mxu3 %v686_v29 }
  0x1a   :  { %221 = vmatpush.bf16.msra.mxu3 %v685_v33 }
  0x1e   :  { %222 = vmatpush.bf16.msra.mxu3 %v684_v34 }
  0x85   :  { %v68_v5 = vpop.f32.mrf.mxu0 }
  0x86   :  { %76 = vperm.xlu0 %718, %v68_v5  }
  0x8d   :  { %v70_v6 = vpop.f32.mrf.mxu0 }
  0x8e   :  { %719 = vset.pattern.permute.xlu0 %v727_v7  ;;  %v701_v6 = vld [vmem:[%s962_s10 + $0x8] sm:$0xff]  ;;  %v700_v7 = vld [vmem:[%s962_s10] sm:$0xff] }
  0x8f   :  { %82 = vperm.xlu0 %719, %v68_v5  }
  0xf8   :  { %v77_v10 = vpop.permute.xlu0 %76 }
  0xf9   :  { %v80_v15 = vmul.f32 %v79_v12, %v77_v10 }
 0x101   :  { %v83_v14 = vpop.permute.xlu0 %82 }
 0x102   :  { %v86_v16 = vmul.f32 %v85_v13, %v83_v14  ;;  %v715_v14 = vld [vmem:[%s964_s12 + $0x38] sm:$0xff] }
 0x103   :  { %519 = vmatpush.bf16.msrb.mxu3 %v715_v14 }
 0x104   :  { %v87_v18 = vadd.f32 %v86_v16, %v80_v15  ;;  %v714_v15 = vld [vmem:[%s964_s12 + $0x30] sm:$0xff]  ;;  %v713_v16 = vld [vmem:[%s964_s12 + $0x28] sm:$0xff] }
 0x106   :  { %v92_v19 = vadd.f32 %v720_v17, %v87_v18  ;;  %v712_v17 = vld [vmem:[%s964_s12 + $0x20] sm:$0xff]  ;;  %v711_v18 = vld [vmem:[%s964_s12 + $0x18] sm:$0xff] }
 0x107   :  { %520 = vmatpush.bf16.msrb.mxu3 %v714_v15 }
 0x108   :  { %v93_v20 = vmax.f32 %v92_v19, 0.0  ;;  %v710_v19 = vld [vmem:[%s964_s12 + $0x10] sm:$0xff] }
 0x10a   :  { %v94_v21 = vpack.c.bf16 %v93_v20, %v93_v20 }
 0x10b   :  { %521 = vmatpush.bf16.msrb.mxu3 %v713_v16 }
 0x10c   :  { %v96_v22 = vsel %vm55_vm0, %v94_v21, 0 }
 0x10d   :  { %105 = vmatpush.bf16.msra.mxu1 %v96_v22 }
 0x10f   :  { %522 = vmatpush.bf16.msrb.mxu3 %v712_v17 }
 0x110   :  { %541 = vmatmul.msk.bf16.vlgmr.msra.gmra.mxu1 %vm51_vm1, %v810_v4 }
 0x111   :  { %315 = vmatpush.bf16.msrb.mxu1 %v699_v41 }
 0x113   :  { %523 = vmatpush.bf16.msrb.mxu3 %v711_v18 }
 0x115   :  { %316 = vmatpush.bf16.msrb.mxu1 %v698_v42 }
 0x117   :  { %524 = vmatpush.bf16.msrb.mxu3 %v710_v19 }
 0x119   :  { %317 = vmatpush.bf16.msrb.mxu1 %v697_v43 }
 0x11b   :  { %525 = vmatpush.bf16.msrb.mxu3 %v709_v24 }
 0x11d   :  { %318 = vmatpush.bf16.msrb.mxu1 %v696_v44 }
 0x11f   :  { %526 = vmatpush.bf16.msrb.mxu3 %v708_v25 }
 0x121   :  { %319 = vmatpush.bf16.msrb.mxu1 %v695_v45 }
 0x125   :  { %320 = vmatpush.bf16.msrb.mxu1 %v694_v46 }
 0x129   :  { %321 = vmatpush.bf16.msrb.mxu1 %v693_v51 }
 0x12d   :  { %322 = vmatpush.bf16.msrb.mxu1 %v692_v52 }
 0x18d   :  { %v107_v30 = vpop.f32.mrf.mxu1 }
 0x18e   :  { %v111_v31 = vpack.c.bf16 %v107_v30, %v107_v30 }
 0x190   :  { %550 = vmatmul.msk.bf16.vlgmr.msra.gmra.mxu2 %vm132_vm2, %v111_v31  ;;  %v725_v31 = vld [vmem:[%s965_s13] ss:$0 sm:$0xff] }
 0x195   :  { %v109_v32 = vpop.f32.mrf.mxu1 }
 0x213   :  { %v145_v36 = vpop.f32.mrf.mxu2 }
 0x214   :  { %v146_v37 = vadd.f32 %v721_v35, %v145_v36 }
 0x216   :  { %v149_v38 = vmax.f32 %v146_v37, 0.0 }
 0x218   :  { %v150_v39 = vpack.c.bf16 %v149_v38, %v149_v38 }
 0x21a   :  { %223 = vmatmul.bf16.vlgmr.msra.gmra.mxu3 %v150_v39 }
 0x21b   :  { %v147_v40 = vpop.f32.mrf.mxu2 }
 0x29d   :  { %v224_v47 = vpop.f32.mrf.mxu3 }
 0x29e   :  { %v228_v48 = vpack.c.bf16 %v224_v47, %v224_v47 }
 0x2a0   :  { %v234_v49 = vsel %vm55_vm0, %v228_v48, 0 }
 0x2a1   :  { %243 = vmatpush.bf16.msrb.mxu0 %v234_v49 }
 0x2a4   :  { %583 = vmatmul.msk.bf16.vlgmr.msrb.gmra.mxu0 %vm51_vm1, %v810_v4 }
 0x2a5   :  { %v226_v50 = vpop.f32.mrf.mxu3  ;;  %415 = vmatpush.bf16.msra.mxu0 %v707_v59 }
 0x2a9   :  { %416 = vmatpush.bf16.msra.mxu0 %v706_v60 }
 0x2ad   :  { %417 = vmatpush.bf16.msra.mxu0 %v705_v61 }
 0x2b1   :  { %418 = vmatpush.bf16.msra.mxu0 %v704_v62 }
 0x2b5   :  { %419 = vmatpush.bf16.msra.mxu0 %v703_v63 }
 0x2b9   :  { %420 = vmatpush.bf16.msra.mxu0 %v702_v0 }
 0x2bd   :  { %421 = vmatpush.bf16.msra.mxu0 %v701_v6 }
 0x2c1   :  { %422 = vmatpush.bf16.msra.mxu0 %v700_v7 }
 0x321   :  { %v245_v54 = vpop.f32.mrf.mxu0 }
 0x322   :  { %v246_v55 = vadd.f32 %v722_v53, %v245_v54 }
 0x324   :  { %v249_v56 = vmax.f32 %v246_v55, 0.0 }
 0x326   :  { %v250_v57 = vpack.c.bf16 %v249_v56, %v249_v56 }
 0x328   :  { %323 = vmatmul.bf16.vlgmr.msrb.gmra.mxu1 %v250_v57 }
 0x329   :  { %v247_v58 = vpop.f32.mrf.mxu0 }
 0x3a5   :  { %v324_v1 = vpop.f32.mrf.mxu1 }
 0x3a6   :  { %v328_v2 = vpack.c.bf16 %v324_v1, %v324_v1 }
 0x3a8   :  { %v334_v3 = vsel %vm55_vm0, %v328_v2, 0 }
 0x3a9   :  { %343 = vmatpush.bf16.msrb.mxu2 %v334_v3 }
 0x3ac   :  { %616 = vmatmul.msk.bf16.vlgmr.msrb.gmra.mxu2 %vm51_vm1, %v810_v4 }
 0x3ad   :  { %v326_v5 = vpop.f32.mrf.mxu1 }
 0x42f   :  { %v345_v9 = vpop.f32.mrf.mxu2 }
 0x430   :  { %v346_v10 = vadd.f32 %v723_v8, %v345_v9 }
 0x432   :  { %v349_v11 = vmax.f32 %v346_v10, 0.0 }
 0x434   :  { %v350_v12 = vpack.c.bf16 %v349_v11, %v349_v11 }
 0x436   :  { %423 = vmatmul.bf16.vlgmr.msra.gmra.mxu0 %v350_v12 }
 0x437   :  { %v347_v13 = vpop.f32.mrf.mxu2 }
 0x4b3   :  { %v424_v20 = vpop.f32.mrf.mxu0 }
 0x4b4   :  { %v428_v21 = vpack.c.bf16 %v424_v20, %v424_v20 }
 0x4b6   :  { %v434_v22 = vsel %vm55_vm0, %v428_v21, 0 }
 0x4b7   :  { %443 = vmatpush.bf16.msra.mxu2 %v434_v22 }
 0x4ba   :  { %649 = vmatmul.msk.bf16.vlgmr.msra.gmra.mxu2 %vm51_vm1, %v810_v4 }
 0x4bb   :  { %v426_v23 = vpop.f32.mrf.mxu0 }
 0x53d   :  { %v445_v27 = vpop.f32.mrf.mxu2 }
 0x53e   :  { %v446_v28 = vadd.f32 %v724_v26, %v445_v27 }
 0x540   :  { %v449_v29 = vmax.f32 %v446_v28, 0.0 }
 0x542   :  { %v450_v30 = vpack.c.bf16 %v449_v29, %v449_v29 }
 0x544   :  { %527 = vmatmul.bf16.vlgmr.msrb.gmra.mxu3 %v450_v30 }
 0x545   :  { %v447_v4 = vpop.f32.mrf.mxu2 }
 0x5c7   :  { %v528_v32 = vpop.f32.mrf.mxu3 }
 0x5c8   :  { %v529_v33 = vadd.f32 %v725_v31, %v528_v32 }
 0x5ca   :  { %vm532_vm3 = vcmp.gt.f32.partialorder %v529_v33, 0.0  ;;  %v533_v34 = vmul.f32 0.01, %v529_v33 }
 0x5cc   :  { %v534_v35 = vsel %vm532_vm3, %v529_v33, %v533_v34 }
 0x5cd   :  { %535 = vst [vmem:[%s966_s14] sm:$0xff] %v534_v35 }
 0x5cf   :  { %v530_v36 = vpop.f32.mrf.mxu3 }

</bundles_post_ra>
